<compile_context>
chip_gen: v7x
topology: tpu7x:2x2x1
jax: 0.10.0
libtpu: 0.0.40
codegen_flags: <defaults>
</compile_context>

<pallas_src>
import jax
import jax.numpy as jnp
from jax.experimental import pallas as pl
from jax.experimental.pallas import tpu as pltpu

# ---------------- configuration (matches the PyTorch module defaults, small shapes) ----
B = 2            # batch
NSENSOR = 8      # nsensor == nnodes (GlobalAttention builds graph_constructor(nsensor, nsensor, ...))
N_GROUP = 8      # n_group
EMB_DIM = 8      # embedding_dim
WIN = 16         # win_size == seq_len
N_HEADS = 1      # SelectAttention heads (module default; forward consumes head 0 only)
D_SEL = 1        # SelectAttention d_sel (module default)
ALPHA = 3.0      # graph_constructor alpha
GC_K = NSENSOR   # k of the inner graph_constructor == nsensor -> top-k mask is all-ones

# hard specialization guards (review: enforce the documented TODOs)
assert GC_K == NSENSOR, "top-k mask folding assumes k == nnodes (all-ones mask)"
assert N_HEADS == 1 and D_SEL == 1, "kernel is specialized to n_heads=1, d_sel=1"


# ======================================================================================
# Kernel 1 (cached, x-independent): graph_constructor -> adj^T
# ======================================================================================
def _graph_tail(nv_cat, wbd_ref, bcat_ref, adjt_ref):
    # n_cat = [n1 | n2] with ONE fused matmul against block_diag(lin1_w, lin2_w)
    n_cat = jnp.tanh(ALPHA * (jnp.dot(nv_cat, wbd_ref[...],
                                      preferred_element_type=jnp.float32) + bcat_ref[...]))
    n1 = n_cat[:, :EMB_DIM]
    n2 = n_cat[:, EMB_DIM:]
    # m12 = n1 @ n2^T, m21 = n2 @ n1^T via rhs-contracted dot_general (MXU-native, no
    # XLU transpose).  a = m12 - m21 is antisymmetric and tanh is odd, so
    # adj^T = tanh(alpha*(m21 - m12)) exactly.  This kernel is OFF the per-call critical
    # path (cached), so the known-good two-matmul form is kept instead of a tiny transpose.
    m12 = jax.lax.dot_general(n1, n2, (((1,), (1,)), ((), ())),
                              preferred_element_type=jnp.float32)
    m21 = jax.lax.dot_general(n2, n1, (((1,), (1,)), ((), ())),
                              preferred_element_type=jnp.float32)
    adjt_ref[...] = jnp.tanh(ALPHA * (m21 - m12))
    # TODO(synk): general k < nnodes top-k masking (with rand tie-break) applies to adj,
    # not adj^T; with k == nnodes the mask is identically ones and is folded away here.


def graph_adj_kernel_identity(embcat_ref, wbd_ref, bcat_ref, adjt_ref):
    # idx is the identity permutation: the embedding lookup is the table itself.
    _graph_tail(embcat_ref[...], wbd_ref, bcat_ref, adjt_ref)


def graph_adj_kernel_general(idx_ref, embcat_ref, wbd_ref, bcat_ref, adjt_ref):
    # embedding lookup as one-hot @ [emb1 | emb2] (keeps the gather on the MXU)
    iota = jax.lax.broadcasted_iota(jnp.int32, (NSENSOR, NSENSOR), 1)
    onehot = (idx_ref[...] == iota).astype(jnp.float32)
    nv_cat = jnp.dot(onehot, embcat_ref[...], preferred_element_type=jnp.float32)
    _graph_tail(nv_cat, wbd_ref, bcat_ref, adjt_ref)


def _is_identity_perm(idx):
    try:
        return bool(jnp.all(idx == jnp.arange(idx.shape[0], dtype=idx.dtype)))
    except Exception:        # traced/abstract idx -> fall back to the general kernel
        return False


def build_adj_t(idx, params):
    """x-independent graph_constructor -> adj^T. Hoisted off the per-call path; cache me."""
    emb_cat = jnp.concatenate([params["emb1"], params["emb2"]], axis=1)        # (N, 2D)
    z = jnp.zeros((EMB_DIM, EMB_DIM), jnp.float32)
    w_bd = jnp.concatenate(
        [jnp.concatenate([params["lin1_w"], z], axis=1),
         jnp.concatenate([z, params["lin2_w"]], axis=1)], axis=0)              # (2D, 2D)
    b_cat = jnp.concatenate([params["lin1_b"], params["lin2_b"]], axis=1)      # (1, 2D)

    vmem = pl.BlockSpec(memory_space=pltpu.MemorySpace.VMEM)
    out_shape = jax.ShapeDtypeStruct((NSENSOR, NSENSOR), jnp.float32)
    if _is_identity_perm(idx):     # review: identity-idx fast path, decided at trace time
        return pl.pallas_call(graph_adj_kernel_identity, out_shape=out_shape,
                              in_specs=[vmem] * 3, out_specs=vmem)(emb_cat, w_bd, b_cat)
    idx2d = idx.reshape(NSENSOR, 1).astype(jnp.int32)
    return pl.pallas_call(graph_adj_kernel_general, out_shape=out_shape,
                          in_specs=[vmem] * 4, out_specs=vmem)(idx2d, emb_cat, w_bd, b_cat)


# ======================================================================================
# Kernel 2 (per-call): SelectAttention + scores + softmax + V, batch folded into lanes
# ======================================================================================
def select_mix_kernel(adjt_ref, xnw_ref, xt_ref, mlpw_ref, selexp_ref, mlpb_ref,
                      v_ref, series_ref):
    # ---- SelectAttention MLP for both batches at once ----
    prod = xnw_ref[...] * mlpw_ref[...]                                        # (N, B*WIN)
    cols = [jnp.sum(prod[:, b * WIN:(b + 1) * WIN], axis=-1, keepdims=True)
            for b in range(B)]                                                 # B x (N, 1)
    newx = jnp.tanh(jnp.concatenate(cols, axis=1) + mlpb_ref[0, 0])            # (N, B)

    # relu(newx * selW) laid out as (N, B*G) with ONE matmul against the wrapper-built
    # expansion matrix (selection weights folded in; the other batch's block is exactly 0,
    # so relu-after-matmul equals relu of the single product).
    sel_all = jnp.maximum(jnp.dot(newx, selexp_ref[...],
                                  preferred_element_type=jnp.float32), 0.0)    # (N, B*G)

    # scores for BOTH batches with one matmul: scores[s, b*G+g] = sum_l adj[l,s]*sel[b,l,g]
    scores = jnp.dot(adjt_ref[...], sel_all,
                     preferred_element_type=jnp.float32)                       # (N, B*G)

    # ---- per-batch softmax over its own G-lane group + value mixing ----
    xt = xt_ref[...]                                                           # (WIN, B*N)
    ser_parts, v_parts = [], []
    for b in range(B):   # static unroll; all slices are static lane slices
        sc = scores[:, b * N_GROUP:(b + 1) * N_GROUP]                          # (N, G)
        m = jnp.max(sc, axis=-1, keepdims=True)
        e = jnp.exp(sc - m)
        # exact divide (not approx reciprocal): its error, amplified by |x| in the V
        # contraction, caused the previous V-vs-reference mismatch.
        ser = e / jnp.sum(e, axis=-1, keepdims=True)                           # (N, G)
        ser_parts.append(ser)
        # V[b][s, g] = sum_l x[b, l, s] * series[b, l, g]
        v_parts.append(jnp.dot(xt[:, b * NSENSOR:(b + 1) * NSENSOR], ser,
                               preferred_element_type=jnp.float32))            # (WIN, G)

    # single lane-dense slab store per output (review: no per-batch partial stores)
    series_ref[...] = jnp.concatenate(ser_parts, axis=1)                       # (N, B*G)
    v_ref[...] = jnp.concatenate(v_parts, axis=1)                              # (WIN, B*G)
    # TODO(synk): nn.Dropout(attention_dropout=0.0) is the identity; mask_flag /
    # attn_mask / queries / keys / values are unused by the PyTorch forward.


# ---------------- wrapper (forward of GlobalAttention) ----------------
def global_attention(idx, queries, keys, values, attn_mask, x, params, adj_t=None):
    # queries / keys / values / attn_mask mirror the PyTorch signature but are unused.
    del queries, keys, values, attn_mask
    x = x.astype(jnp.float32)

    if adj_t is None:
        adj_t = build_adj_t(idx, params)       # x-independent; cacheable across calls

    # wrapper-side layout plumbing (free): batch folded into the lane axis
    x_nw = jnp.transpose(x, (1, 0, 2)).reshape(NSENSOR, B * WIN)               # (N, B*WIN)
    xt_cat = jnp.transpose(x, (2, 0, 1)).reshape(WIN, B * NSENSOR)             # (WIN, B*N)
    mlp_w = jnp.tile(params["mlp_w"].reshape(1, WIN), (1, B))                  # (1, B*WIN)
    mlp_b = params["mlp_b"].reshape(1, 1)                                      # SMEM scalar
    # selexp[b, b*G + g] = selW[0, g, 0]; other blocks are zero
    selexp = jnp.kron(jnp.eye(B, dtype=jnp.float32),
                      params["selW"][0, :, 0].reshape(1, N_GROUP))             # (B, B*G)

    vmem = pl.BlockSpec(memory_space=pltpu.MemorySpace.VMEM)
    smem = pl.BlockSpec(memory_space=pltpu.MemorySpace.SMEM)
    v_slab, s_slab = pl.pallas_call(
        select_mix_kernel,
        out_shape=(jax.ShapeDtypeStruct((WIN, B * N_GROUP), jnp.float32),      # V slab
                   jax.ShapeDtypeStruct((NSENSOR, B * N_GROUP), jnp.float32)), # series slab
        in_specs=[vmem, vmem, vmem, vmem, vmem, smem],
        out_specs=(vmem, vmem),
    )(adj_t, x_nw, xt_cat, mlp_w, selexp, mlp_b)

    # un-fold the batch lane groups back to the module's output shapes (wrapper-side)
    V = v_slab.reshape(WIN, B, N_GROUP).transpose(1, 0, 2)                     # (B, WIN, G)
    series = s_slab.reshape(NSENSOR, B, N_GROUP).transpose(1, 0, 2)            # (B, N, G)
    return V, series   # series returned as if output_attention=True (for validation)


# ---------------- pure-JAX reference (matches PyTorch semantics) ----------------
def reference(idx, x, params):
    nv1 = params["emb1"][idx]
    nv2 = params["emb2"][idx]
    n1 = jnp.tanh(ALPHA * (nv1 @ params["lin1_w"] + params["lin1_b"]))
    n2 = jnp.tanh(ALPHA * (nv2 @ params["lin2_w"] + params["lin2_b"]))
    a = n1 @ n2.T - n2 @ n1.T
    adj = jnp.tanh(ALPHA * a)
    # top-k mask with k == nnodes selects every column -> mask of ones -> adj unchanged

    x_flat = x.reshape(B * NSENSOR, WIN)
    newx = jnp.tanh(x_flat @ params["mlp_w"] + params["mlp_b"])
    newx = newx.reshape(B, N_HEADS, NSENSOR, D_SEL)
    select_ = jax.nn.relu(jnp.einsum("bhnd,hgd->bhng", newx, params["selW"]))
    sel0 = select_[:, 0]                                       # select_matrix[:, 0, :, :]

    scores = jnp.einsum("ls,blg->bsg", adj, sel0)
    series = jax.nn.softmax(scores, axis=-1)
    V = jnp.einsum("bls,blg->bsg", x, series)
    return V, series


# ---------------- deterministic parameter init ----------------
def init_params(key):
    ks = jax.random.split(key, 9)
    s = 0.4
    return {
        "emb1":   s * jax.random.normal(ks[0], (NSENSOR, EMB_DIM), jnp.float32),
        "emb2":   s * jax.random.normal(ks[1], (NSENSOR, EMB_DIM), jnp.float32),
        "lin1_w": s * jax.random.normal(ks[2], (EMB_DIM, EMB_DIM), jnp.float32),
        "lin1_b": s * jax.random.normal(ks[3], (1, EMB_DIM), jnp.float32),
        "lin2_w": s * jax.random.normal(ks[4], (EMB_DIM, EMB_DIM), jnp.float32),
        "lin2_b": s * jax.random.normal(ks[5], (1, EMB_DIM), jnp.float32),
        "mlp_w":  s * jax.random.normal(ks[6], (WIN, N_HEADS * D_SEL), jnp.float32),
        "mlp_b":  s * jax.random.normal(ks[7], (1, N_HEADS * D_SEL), jnp.float32),
        "selW":   jax.random.normal(ks[8], (N_HEADS, N_GROUP, D_SEL), jnp.float32),
    }


if __name__ == "__main__":
    root = jax.random.PRNGKey(0)
    kp, kx, kq, kk, kv = jax.random.split(root, 5)
    params = init_params(kp)

    idx = jnp.arange(NSENSOR, dtype=jnp.int32)
    x = jax.random.normal(kx, (B, NSENSOR, WIN), jnp.float32)
    # unused-by-forward tensors, kept to mirror the PyTorch signature
    queries = jax.random.normal(kq, (B, WIN, NSENSOR), jnp.float32)
    keys    = jax.random.normal(kk, (B, WIN, NSENSOR), jnp.float32)
    values  = jax.random.normal(kv, (B, WIN, NSENSOR), jnp.float32)
    attn_mask = None

    V, series = global_attention(idx, queries, keys, values, attn_mask, x, params)
    V, series = jax.block_until_ready((V, series))

    V_ref, S_ref = reference(idx, x, params)
    assert V.shape == (B, WIN, N_GROUP) and series.shape == (B, NSENSOR, N_GROUP)
    assert jnp.allclose(series, S_ref, atol=2e-3, rtol=2e-3), "series mismatch vs reference"
    assert jnp.allclose(V, V_ref, atol=2e-3, rtol=2e-3), "V mismatch vs reference"

    print("KERNEL_OK")
</pallas_src>

<mosaic_0001>
module attributes {stable_mosaic.version = 11 : i64} {
  func.func @graph_adj_kernel_identity(%arg0: memref<8x16xf32, #tpu.memory_space<vmem>>, %arg1: memref<16x16xf32, #tpu.memory_space<vmem>>, %arg2: memref<1x16xf32, #tpu.memory_space<vmem>>, %arg3: memref<8x8xf32, #tpu.memory_space<vmem>>) attributes {dimension_semantics = [], scalar_prefetch = 0 : i64, scratch_operands = 0 : i64, tpu.core_type = #tpu.core_type<tc>} {
    %c0 = arith.constant 0 : index
    %c0_0 = arith.constant 0 : index
    %0 = vector.load %arg0[%c0, %c0_0] : memref<8x16xf32, #tpu.memory_space<vmem>>, vector<8x16xf32>
    %c0_1 = arith.constant 0 : index
    %c0_2 = arith.constant 0 : index
    %1 = vector.load %arg1[%c0_1, %c0_2] : memref<16x16xf32, #tpu.memory_space<vmem>>, vector<16x16xf32>
    %cst = arith.constant dense<0.000000e+00> : vector<8x16xf32>
    %2 = tpu.matmul %0, %1, %cst {dimension_numbers = #tpu.dot_dimension_numbers<[1], [0], [0], [1], [0, 0, 1, 1], [], []>} : vector<8x16xf32>, vector<16x16xf32>, vector<8x16xf32> -> vector<8x16xf32>
    %c0_3 = arith.constant 0 : index
    %c0_4 = arith.constant 0 : index
    %3 = vector.load %arg2[%c0_3, %c0_4] : memref<1x16xf32, #tpu.memory_space<vmem>>, vector<1x16xf32>
    %4 = vector.broadcast %3 : vector<1x16xf32> to vector<8x16xf32>
    %5 = arith.addf %2, %4 : vector<8x16xf32>
    %cst_5 = arith.constant 3.000000e+00 : f32
    %6 = vector.broadcast %cst_5 : f32 to vector<8x16xf32>
    %7 = arith.mulf %6, %5 : vector<8x16xf32>
    %8 = math.tanh %7 : vector<8x16xf32>
    %9 = vector.extract_strided_slice %8 {offsets = [0, 0], sizes = [8, 8], strides = [1, 1]} : vector<8x16xf32> to vector<8x8xf32>
    %10 = vector.extract_strided_slice %8 {offsets = [0, 8], sizes = [8, 8], strides = [1, 1]} : vector<8x16xf32> to vector<8x8xf32>
    %cst_6 = arith.constant dense<0.000000e+00> : vector<8x8xf32>
    %11 = tpu.matmul %9, %10, %cst_6 {dimension_numbers = #tpu.dot_dimension_numbers<[1], [1], [0], [0], [0, 0, 1, 0], [], []>} : vector<8x8xf32>, vector<8x8xf32>, vector<8x8xf32> -> vector<8x8xf32>
    %cst_7 = arith.constant dense<0.000000e+00> : vector<8x8xf32>
    %12 = tpu.matmul %10, %9, %cst_7 {dimension_numbers = #tpu.dot_dimension_numbers<[1], [1], [0], [0], [0, 0, 1, 0], [], []>} : vector<8x8xf32>, vector<8x8xf32>, vector<8x8xf32> -> vector<8x8xf32>
    %13 = arith.subf %12, %11 : vector<8x8xf32>
    %cst_8 = arith.constant 3.000000e+00 : f32
    %14 = vector.broadcast %cst_8 : f32 to vector<8x8xf32>
    %15 = arith.mulf %14, %13 : vector<8x8xf32>
    %16 = math.tanh %15 : vector<8x8xf32>
    %c0_9 = arith.constant 0 : index
    %c0_10 = arith.constant 0 : index
    %17 = vector.load %arg3[%c0_9, %c0_10] : memref<8x8xf32, #tpu.memory_space<vmem>>, vector<8x8xf32>
    tpu.vector_store %arg3[%c0_9, %c0_10], %16 {strides = array<i32>} : memref<8x8xf32, #tpu.memory_space<vmem>>, vector<8x8xf32>,
    return
  }
}

</mosaic_0001>

<bundles_post_ra>
// kernel: tpu_custom_call.1
= control target key start
LH: loop header
LB: loop body
LE: loop exit
PB: predicated region body
PF: predicated region fallthrough
CT: control target
= control target key end

     0   :  { %8 = vsyncpa [#allocation3], 0  ;;  %s493_s0 = inlined_call_operand.hbm [shape: f32[8,16], index: 0, kind: input, shape index: {}]   ;;  %s494_s1 = inlined_call_operand.hbm [shape: f32[16,16], index: 1, kind: input, shape index: {}]   ;;  %s495_s2 = inlined_call_operand.vmem [shape: f32[1,16], index: 2, kind: input, shape index: {}]   ;;  %s496_s3 = inlined_call_operand.hbm [shape: f32[8,8], index: 3, kind: output, shape index: {}]  }
   0x1   :  { %9 = vsyncpa [#allocation6], 0 }
   0x2   :  { %10 = vsyncpa [#allocation4], 0  ;;  %s413_s12 = smov [#allocation2]   ;;  %s414_s14 = smov [#allocation5]  }
   0x3   :  { %s17_s13 = sshll.u32 %s413_s12, 4  ;;  %s26_s15 = sshll.u32 %s414_s14, 4  ;;  %s18_s13 = int_to_ptr.vmem [resolvable:$true] %s17_s13  ;;  %s442_s15 = int_to_ptr.vmem [resolvable:$true] %s26_s15 }
   0x4   :  { %s341_s18 = scalar_lea.hbm %s493_s0, 128 }
   0x5   :  { %p342_p0 = scmp.ne.s32.totalorder %s493_s0, %s341_s18  ;;  %p345_p1 = scmp.lt.u32.totalorder %s341_s18, %s493_s0 }
   0x7   :  { %p347_p2 = pnand %p345_p1, %p342_p0 }
   0x9   :  { %350 = shalt.err (!%p347_p2)
}
   0xa   :  { %s351_s23 = scalar_lea.vmem %s18_s13, 128  ;;  %p356_p4 = scmp.lt.s32.totalorder %s18_s13, %s18_s13 }
   0xb   :  { %p352_p3 = scmp.ne.s32.totalorder %s18_s13, %s351_s23  ;;  %p357_p5 = scmp.lt.s32.totalorder %s351_s23, %s351_s23 }
   0xd   :  { %p358_p6 = por %p357_p5, %p356_p4 }
   0xf   :  { %p359_p7 = pnand %p358_p6, %p352_p3 }
  0x11   :  { %362 = shalt.err (!%p359_p7)
}
  0x12   :  { %20 = dma.hbm_to_vmem [thread:$0]  %s493_s0, 128, %s18_s13, [#allocation3]  }
  0x13   :  { %s363_s28 = scalar_lea.hbm %s494_s1, 256 }
  0x14   :  { %p364_p8 = scmp.ne.s32.totalorder %s494_s1, %s363_s28  ;;  %p367_p9 = scmp.lt.u32.totalorder %s363_s28, %s494_s1 }
  0x16   :  { %p369_p10 = pnand %p367_p9, %p364_p8 }
  0x18   :  { %372 = shalt.err (!%p369_p10)
}
  0x19   :  { %s373_s6 = scalar_lea.vmem %s442_s15, 256  ;;  %p378_p12 = scmp.lt.s32.totalorder %s442_s15, %s442_s15 }
  0x1a   :  { %p374_p11 = scmp.ne.s32.totalorder %s442_s15, %s373_s6  ;;  %p379_p13 = scmp.lt.s32.totalorder %s373_s6, %s373_s6 }
  0x1c   :  { %p380_p0 = por %p379_p13, %p378_p12 }
  0x1e   :  { %p381_p1 = pnand %p380_p0, %p374_p11 }
  0x20   :  { %384 = shalt.err (!%p381_p1)
}
  0x21   :  { %s415_s0 = smov 128   ;;  %s416_s7 = smov 8  }
  0x22   :  { %32 = dma.hbm_to_vmem [thread:$0]  %s494_s1, 256, %s442_s15, [#allocation6], %s415_s0, %s415_s0, %s416_s7  }
  0x23   :  { %407 = dma.done.wait [#allocation3], 128  }
  0x24   :  { %408 = vsyncadd [#allocation3], 4294967168 }
  0x25   :  { %409 = dma.done.wait [#allocation6], 256  }
  0x26   :  { %410 = vsyncadd [#allocation6], 4294967040  ;;  %v417_v0 = vmov 0.0|0.0   ;;  %vm418_vm0 = vmmov 0   ;;  %v419_v1 = vmov 0.0   ;;  %v42_v2 = vld [vmem:[#allocation5] sm:$0xff] }
  0x27   :  { %325 = vmatprep.subr.bf16.mxu0 %v417_v0  ;;  %312 = vmatprep.mubr.msk.f32.mxu0 %vm418_vm0, %v419_v1  ;;  %v43_v3 = vld [vmem:[#allocation5 + $0x8] sm:$0xff]  ;;  %v41_v5 = vld [vmem:[#allocation2] sm:$0xff]  ;;  %vm51_vm1 = vcmask 130048   ;;  %vm130_vm2 = vcmask 64512   ;;  %s420_s11 = smov 120  }
  0x28   :  { %315 = vmatprep.subr.mxu1 %v419_v1  ;;  %317 = vmatprep.mubr.msk.f32.mxu1 %vm418_vm0, %v419_v1  ;;  %v326_v4 = vpack.c.bf16 %v43_v3, %v42_v2  ;;  %v295_v6 = vld [vmem:[%s495_s2] ss:$0 sm:$0xff]  ;;  %s421_s2 = smov [#allocation7]  }
  0x29   :  { %s285_s12 = sshll.u32 %s421_s2, 4  ;;  %s286_s12 = int_to_ptr.vmem [resolvable:$true] %s285_s12 }
  0x2a   :  { %327 = vmatpush3.bf16.msra.mxu0 %v326_v4  ;;  %s385_s13 = scalar_lea.vmem %s286_s12, 128  ;;  %p390_p3 = scmp.lt.s32.totalorder %s286_s12, %s286_s12 }
  0x2b   :  { %320 = vmatprep.subr.mxu0 %v419_v1  ;;  %p386_p2 = scmp.ne.s32.totalorder %s286_s12, %s385_s13  ;;  %p391_p4 = scmp.lt.s32.totalorder %s385_s13, %s385_s13 }
  0x2d   :  { %313 = vmatmul.mubr.msk.f32.vlgmr.msra.gmra.mrb[0].mxu0 %vm51_vm1, %v41_v5  ;;  %p392_p5 = por %p391_p4, %p390_p3 }
  0x2e   :  { %322 = vmatprep.mubr.msk.f32.mxu0 %vm418_vm0, %v419_v1 }
  0x2f   :  { %p393_p6 = pnand %p392_p5, %p386_p2 }
 0x100   :  { %v121_v7 = vpop.f32.mrb[0].mxu0 }
 0x101   :  { %v122_v8 = vadd.f32 %v295_v6, %v121_v7  ;;  %v314_v9 = vpop.f32.mrb[1].mxu0 }
 0x103   :  { %v125_v10 = vmul.f32 3.0, %v122_v8 }
 0x105   :  { %337 = vtanh.f32 %v125_v10 }
 0x10f   :  { %v338_v11 = vpop.eup %337 }
 0x110   :  { %128 = vrot.lane.b32.xlu0 %v338_v11, %s420_s11  ;;  %321 = vmatpush3.xpose.msk.msra.mxu0 %vm130_vm2, %v338_v11 }
 0x182   :  { %v129_v12 = vpop.permute.xlu0 %128 }
 0x183   :  { %316 = vmatpush3.xpose.msk.msra.mxu1 %vm130_vm2, %v129_v12  ;;  %323 = vmatmul.mubr.msk.f32.vlgmr.msra.gmra.mrb[2].mxu0 %vm130_vm2, %v129_v12 }
 0x186   :  { %318 = vmatmul.mubr.msk.f32.vlgmr.msra.gmra.mrb[0].mxu1 %vm130_vm2, %v338_v11 }
 0x256   :  { %v271_v13 = vpop.f32.mrb[2].mxu0 }
 0x257   :  { %v324_v14 = vpop.f32.mrb[3].mxu0 }
 0x259   :  { %v201_v15 = vpop.f32.mrb[0].mxu1 }
 0x25a   :  { %v275_v16 = vsub.f32 %v271_v13, %v201_v15  ;;  %v319_v17 = vpop.f32.mrb[1].mxu1 }
 0x25c   :  { %v276_v18 = vmul.f32 3.0, %v275_v16 }
 0x25e   :  { %339 = vtanh.f32 %v276_v18 }
 0x268   :  { %v340_v19 = vpop.eup %339 }
 0x269   :  { %278 = vst.msk [vmem:[#allocation7] sm:$0xff] %vm130_vm2, %v340_v19 }
 0x26a   :  { %396 = shalt.err (!%p393_p6)
}
 0x26b   :  { %s397_s16 = scalar_lea.hbm %s496_s3, 128 }
 0x26c   :  { %p398_p7 = scmp.ne.s32.totalorder %s496_s3, %s397_s16  ;;  %p401_p8 = scmp.lt.u32.totalorder %s397_s16, %s496_s3 }
 0x26e   :  { %p403_p9 = pnand %p401_p8, %p398_p7 }
 0x270   :  { %406 = shalt.err (!%p403_p9)
}
 0x271   :  { %288 = dma.vmem_to_hbm [thread:$0]  %s286_s12, 128, %s496_s3, [#allocation4]  }
 0x272   :  { %411 = dma.done.wait [#allocation4], 128  }
 0x273   :  { %412 = vsyncadd [#allocation4], 4294967168 }
 0x274   :  { %292 = vsyncpa [#allocation3], 1 }
 0x275   :  { %293 = vsyncpa [#allocation6], 1 }
 0x276   :  { %294 = vsyncpa [#allocation4], 1 }

</bundles_post_ra>
